<compile_context>
chip_gen: v5e
topology: v5e:2x2
jax: 0.10.0
libtpu: 0.0.40
codegen_flags: <defaults>
</compile_context>

<pallas_src>
import functools
import math

import jax
import jax.numpy as jnp
from jax.experimental import pallas as pl
from jax.experimental.pallas import tpu as pltpu


def _pick_tile(dim, cap, align):
    """Tile size for `dim`:
       - the full dim if it already fits under `cap` (always a legal block),
       - else the largest multiple of `align` <= cap that divides dim exactly
         (keeps blocks (8,128)-aligned and the grid exact, no masked edges),
       - else (awkward factors) the largest exact divisor <= cap."""
    if dim <= cap:
        return dim
    t = (cap // align) * align
    while t >= align:
        if dim % t == 0:
            return t
        t -= align
    for t in range(cap, 0, -1):
        if dim % t == 0:
            return t
    return dim


# ---------------------------------------------------------------------------
# Tiled linear kernel:  y = x @ W^T + b     (W in torch (Dout, Din) layout)
# ---------------------------------------------------------------------------

def _linear_kernel(x_ref, w_ref, b_ref, o_ref, acc_ref):
    k = pl.program_id(2)

    @pl.when(k == 0)
    def _init():
        acc_ref[...] = jnp.zeros_like(acc_ref)

    # x tile (tm, tk), w tile (tn, tk): contract the K axis of both (== x @ w.T)
    # so no transposed weight copy is ever materialized in HBM.
    acc_ref[...] += jax.lax.dot_general(
        x_ref[...], w_ref[...],
        dimension_numbers=(((1,), (1,)), ((), ())),
        preferred_element_type=jnp.float32)

    @pl.when(k == pl.num_programs(2) - 1)
    def _finalize():
        o_ref[...] = (acc_ref[...] + b_ref[...].astype(jnp.float32)).astype(o_ref.dtype)


def _linear(x, w, b, *, tm_cap=512, tn_cap=512, tk_cap=1024):
    """x: (M, Din), w: (Dout, Din) [torch Linear layout], b: (Dout,)."""
    M, Din = x.shape
    Dout = w.shape[0]
    tm = _pick_tile(M, tm_cap, 8)       # sublane dim
    tn = _pick_tile(Dout, tn_cap, 128)  # lane dim of out / bias
    tk = _pick_tile(Din, tk_cap, 128)   # lane dim of x / w
    b2 = b.reshape(1, Dout)
    nbytes = x.dtype.itemsize
    gm, gn = M // tm, Dout // tn
    cost = pl.CostEstimate(
        flops=2 * M * Dout * Din,
        transcendentals=0,
        bytes_accessed=(gn * M * Din + gm * Dout * Din + M * Dout + Dout) * nbytes)
    return pl.pallas_call(
        _linear_kernel,
        out_shape=jax.ShapeDtypeStruct((M, Dout), x.dtype),
        grid=(gm, gn, Din // tk),
        in_specs=[
            pl.BlockSpec((tm, tk), lambda i, j, k: (i, k)),
            pl.BlockSpec((tn, tk), lambda i, j, k: (j, k)),
            pl.BlockSpec((1, tn), lambda i, j, k: (0, j)),
        ],
        out_specs=pl.BlockSpec((tm, tn), lambda i, j, k: (i, j)),
        scratch_shapes=[pltpu.VMEM((tm, tn), jnp.float32)],
        compiler_params=pltpu.CompilerParams(
            dimension_semantics=("parallel", "parallel", "arbitrary"),
            vmem_limit_bytes=32 * 1024 * 1024),
        cost_estimate=cost,
    )(x, w, b2)


# ---------------------------------------------------------------------------
# Flash-style GQA attention kernel (online softmax, tiled over rows & kv).
# Reads q/k/v as row-major (tokens, features) blocks and loops over heads
# inside the kernel; writes the output lane-dense in (B*S, D) layout.
# 1/sqrt(hd) is already folded into the Q projection weights.
# ---------------------------------------------------------------------------

def _make_gqa_kernel(num_heads, hpg, hd):
    def kernel(q_ref, k_ref, v_ref, o_ref, m_ref, l_ref, acc_ref):
        kv_step = pl.program_id(2)

        @pl.when(kv_step == 0)
        def _init():
            m_ref[...] = jnp.full_like(m_ref, -jnp.inf)
            l_ref[...] = jnp.zeros_like(l_ref)
            acc_ref[...] = jnp.zeros_like(acc_ref)

        k_all = k_ref[...]          # (tkv, G*hd)  native dtype -> MXU
        v_all = v_ref[...]          # (tkv, G*hd)

        # Static unrolled loop over query heads; all heads of a group reuse the
        # same resident K/V tile.  No attention mask is applied, so sharing a
        # (row, kv) tile across heads is exact.
        for h in range(num_heads):
            g = h // hpg
            q_h = q_ref[:, h * hd:(h + 1) * hd]      # (tq, hd), scale pre-folded
            k_g = k_all[:, g * hd:(g + 1) * hd]      # (tkv, hd)
            v_g = v_all[:, g * hd:(g + 1) * hd]      # (tkv, hd)

            s = jax.lax.dot_general(                 # q_h @ k_g.T -> (tq, tkv) f32
                q_h, k_g, dimension_numbers=(((1,), (1,)), ((), ())),
                preferred_element_type=jnp.float32)

            m_prev = m_ref[:, h:h + 1]
            m_new = jnp.maximum(m_prev, jnp.max(s, axis=-1, keepdims=True))
            alpha = jnp.exp(m_prev - m_new)
            p = jnp.exp(s - m_new)
            l_ref[:, h:h + 1] = alpha * l_ref[:, h:h + 1] + jnp.sum(
                p, axis=-1, keepdims=True)
            acc_ref[h] = alpha * acc_ref[h] + jnp.dot(
                p.astype(v_g.dtype), v_g, preferred_element_type=jnp.float32)
            m_ref[:, h:h + 1] = m_new

        @pl.when(kv_step == pl.num_programs(2) - 1)
        def _finalize():
            for h in range(num_heads):
                inv_l = pl.reciprocal(l_ref[:, h:h + 1], approx=True)  # EUP slot
                o_ref[:, h * hd:(h + 1) * hd] = (acc_ref[h] * inv_l).astype(o_ref.dtype)
    return kernel


def _gqa_attention(q, k, v, *, batch, seq, num_heads, num_groups,
                   tq_cap=256, tkv_cap=512):
    """q: (B*S, D), k/v: (B*S, G*hd) row-major -> out: (B*S, D) row-major."""
    BS, D = q.shape
    kv_dims = k.shape[1]
    hd = D // num_heads
    hpg = num_heads // num_groups
    assert BS == batch * seq
    tq = _pick_tile(seq, tq_cap, 8)
    tkv = _pick_tile(seq, tkv_cap, 8)
    row_q = seq // tq
    row_k = seq // tkv
    nbytes = q.dtype.itemsize
    cost = pl.CostEstimate(
        flops=4 * BS * seq * D,
        transcendentals=BS * seq * num_heads,
        bytes_accessed=(2 * BS * D + 2 * row_q * BS * kv_dims) * nbytes)
    return pl.pallas_call(
        _make_gqa_kernel(num_heads, hpg, hd),
        out_shape=jax.ShapeDtypeStruct((BS, D), q.dtype),
        grid=(batch, row_q, row_k),              # kv reduction axis last
        in_specs=[
            pl.BlockSpec((tq, D), lambda b, qi, ki: (b * row_q + qi, 0)),
            pl.BlockSpec((tkv, kv_dims), lambda b, qi, ki: (b * row_k + ki, 0)),
            pl.BlockSpec((tkv, kv_dims), lambda b, qi, ki: (b * row_k + ki, 0)),
        ],
        out_specs=pl.BlockSpec((tq, D), lambda b, qi, ki: (b * row_q + qi, 0)),
        scratch_shapes=[
            pltpu.VMEM((tq, num_heads), jnp.float32),        # running max per head
            pltpu.VMEM((tq, num_heads), jnp.float32),        # running sum per head
            pltpu.VMEM((num_heads, tq, hd), jnp.float32),    # f32 output accumulator
        ],
        compiler_params=pltpu.CompilerParams(
            dimension_semantics=("parallel", "parallel", "arbitrary"),
            vmem_limit_bytes=32 * 1024 * 1024),
        cost_estimate=cost,
    )(q, k, v)


# ---------------------------------------------------------------------------
# Module wrapper
# ---------------------------------------------------------------------------

def init_gqa_params(key, dims, num_heads, num_groups, dtype=jnp.float32):
    # dtype=jnp.bfloat16 is supported by both kernels (f32 accumulation kept).
    head_dims = dims // num_heads
    kv_dims = head_dims * num_groups
    ks = jax.random.split(key, 8)
    s = 0.02
    return {
        "wq_w": jax.random.normal(ks[0], (dims, dims), dtype) * s,
        "wq_b": jax.random.normal(ks[1], (dims,), dtype) * s,
        "wk_w": jax.random.normal(ks[2], (kv_dims, dims), dtype) * s,
        "wk_b": jax.random.normal(ks[3], (kv_dims,), dtype) * s,
        "wv_w": jax.random.normal(ks[4], (kv_dims, dims), dtype) * s,
        "wv_b": jax.random.normal(ks[5], (kv_dims,), dtype) * s,
        "wo_w": jax.random.normal(ks[6], (dims, dims), dtype) * s,
        "wo_b": jax.random.normal(ks[7], (dims,), dtype) * s,
    }


def fuse_gqa_params(params, num_heads):
    """One-time parameter prep (runs once, outside jit):
       - concatenate Q/K/V weights+bias into a single fused QKV projection,
       - fold the 1/sqrt(head_dim) softmax scale into the Q weights/bias."""
    dims = params["wq_w"].shape[0]
    hd = dims // num_heads
    scale = jnp.asarray(1.0 / math.sqrt(hd), params["wq_w"].dtype)
    return {
        "wqkv_w": jnp.concatenate(
            [params["wq_w"] * scale, params["wk_w"], params["wv_w"]], axis=0),
        "wqkv_b": jnp.concatenate(
            [params["wq_b"] * scale, params["wk_b"], params["wv_b"]], axis=0),
        "wo_w": params["wo_w"],
        "wo_b": params["wo_b"],
    }


def gqa_forward(fused_params, x, num_heads, num_groups):
    """x: (B, S, D) -> (B, S, D).  dropout=0.0 (identity), attention_mask=None."""
    B, S, D = x.shape
    hd = D // num_heads
    kv_dims = hd * num_groups
    x2 = x.reshape(B * S, D)

    # Fused QKV projection: x read from HBM once, fused weights built at init.
    qkv = _linear(x2, fused_params["wqkv_w"], fused_params["wqkv_b"])

    # Row-major column slices (one cheap copy pass; no transposes anywhere).
    # TODO(synk): when D and G*hd are 128-multiples these slices can be removed
    # by indexing the attention BlockSpecs directly into the fused qkv buffer.
    q = qkv[:, :D]
    k = qkv[:, D:D + kv_dims]
    v = qkv[:, D + kv_dims:]

    o = _gqa_attention(q, k, v, batch=B, seq=S,
                       num_heads=num_heads, num_groups=num_groups)  # (B*S, D)

    out = _linear(o, fused_params["wo_w"], fused_params["wo_b"])    # (B*S, D)
    return out.reshape(B, S, D)


# Pure-JAX reference (uses the unfused torch-layout params) for verification.
def gqa_reference(params, x, num_heads, num_groups):
    B, S, D = x.shape
    hd = D // num_heads
    hpg = num_heads // num_groups
    q = x @ params["wq_w"].T + params["wq_b"]
    k = x @ params["wk_w"].T + params["wk_b"]
    v = x @ params["wv_w"].T + params["wv_b"]
    q = q.reshape(B, S, num_heads, hd).transpose(0, 2, 1, 3)
    k = k.reshape(B, S, num_groups, hd).transpose(0, 2, 1, 3)
    v = v.reshape(B, S, num_groups, hd).transpose(0, 2, 1, 3)
    k = jnp.repeat(k, hpg, axis=1)
    v = jnp.repeat(v, hpg, axis=1)
    scores = jnp.einsum("bhqd,bhkd->bhqk", q, k) / math.sqrt(hd)
    prob = jax.nn.softmax(scores, axis=-1)
    o = jnp.einsum("bhqk,bhkd->bhqd", prob, v)
    o = o.transpose(0, 2, 1, 3).reshape(B, S, D)
    return o @ params["wo_w"].T + params["wo_b"]


if __name__ == "__main__":
    B, S, D = 2, 8, 32
    num_heads, num_groups = 4, 2

    key = jax.random.PRNGKey(0)
    kp, kx = jax.random.split(key)
    params = init_gqa_params(kp, D, num_heads, num_groups)
    fused = fuse_gqa_params(params, num_heads)        # one-time concat + scale fold
    x = jax.random.normal(kx, (B, S, D), jnp.float32)

    fwd = jax.jit(functools.partial(gqa_forward, num_heads=num_heads,
                                    num_groups=num_groups))
    out = jax.block_until_ready(fwd(fused, x))

    ref = gqa_reference(params, x, num_heads, num_groups)
    assert out.shape == (B, S, D)
    max_err = float(jnp.max(jnp.abs(out - ref)))
    assert jnp.allclose(out, ref, atol=2e-3, rtol=2e-3), (
        f"mismatch vs reference: max abs err = {max_err}")

    print("KERNEL_OK")
</pallas_src>

<mosaic_0001>
module attributes {stable_mosaic.version = 11 : i64} {
  func.func @_linear_kernel(%arg0: i32, %arg1: i32, %arg2: i32, %arg3: memref<16x32xf32, #tpu.memory_space<vmem>>, %arg4: memref<64x32xf32, #tpu.memory_space<vmem>>, %arg5: memref<1x64xf32, #tpu.memory_space<vmem>>, %arg6: memref<16x64xf32, #tpu.memory_space<vmem>>, %arg7: memref<16x64xf32, #tpu.memory_space<vmem>>) attributes {dimension_semantics = [#tpu.dimension_semantics<parallel>, #tpu.dimension_semantics<parallel>, #tpu.dimension_semantics<arbitrary>], iteration_bounds = array<i64: 1, 1, 1>, scalar_prefetch = 0 : i64, scratch_operands = 1 : i64, tpu.core_type = #tpu.core_type<tc>, window_params = [{transform_indices = @transform_0, window_bounds = array<i64: 16, 32>}, {transform_indices = @transform_1, window_bounds = array<i64: 64, 32>}, {transform_indices = @transform_2, window_bounds = array<i64: 1, 64>}, {transform_indices = @transform_3, window_bounds = array<i64: 16, 64>}]} {
    %c0_i32 = arith.constant 0 : i32
    %0 = arith.cmpi eq, %arg2, %c0_i32 : i32
    %1 = arith.extui %0 : i1 to i32
    %c0_i32_0 = arith.constant 0 : i32
    %2 = arith.cmpi ne, %1, %c0_i32_0 : i32
    scf.if %2 {
      %cst_10 = arith.constant 0.000000e+00 : f32
      %12 = vector.broadcast %cst_10 : f32 to vector<16x64xf32>
      %c0_11 = arith.constant 0 : index
      %c0_12 = arith.constant 0 : index
      %13 = vector.load %arg7[%c0_11, %c0_12] : memref<16x64xf32, #tpu.memory_space<vmem>>, vector<16x64xf32>
      tpu.vector_store %arg7[%c0_11, %c0_12], %12 {strides = array<i32>} : memref<16x64xf32, #tpu.memory_space<vmem>>, vector<16x64xf32>,
    } else {
    }
    %c0 = arith.constant 0 : index
    %c0_1 = arith.constant 0 : index
    %3 = vector.load %arg7[%c0, %c0_1] : memref<16x64xf32, #tpu.memory_space<vmem>>, vector<16x64xf32>
    %c0_2 = arith.constant 0 : index
    %c0_3 = arith.constant 0 : index
    %4 = vector.load %arg3[%c0_2, %c0_3] : memref<16x32xf32, #tpu.memory_space<vmem>>, vector<16x32xf32>
    %c0_4 = arith.constant 0 : index
    %c0_5 = arith.constant 0 : index
    %5 = vector.load %arg4[%c0_4, %c0_5] : memref<64x32xf32, #tpu.memory_space<vmem>>, vector<64x32xf32>
    %cst = arith.constant dense<0.000000e+00> : vector<16x64xf32>
    %6 = tpu.matmul %4, %5, %cst {dimension_numbers = #tpu.dot_dimension_numbers<[1], [1], [0], [0], [0, 0, 1, 0], [], []>} : vector<16x32xf32>, vector<64x32xf32>, vector<16x64xf32> -> vector<16x64xf32>
    %7 = arith.addf %3, %6 : vector<16x64xf32>
    %c0_6 = arith.constant 0 : index
    %c0_7 = arith.constant 0 : index
    %8 = vector.load %arg7[%c0_6, %c0_7] : memref<16x64xf32, #tpu.memory_space<vmem>>, vector<16x64xf32>
    tpu.vector_store %arg7[%c0_6, %c0_7], %7 {strides = array<i32>} : memref<16x64xf32, #tpu.memory_space<vmem>>, vector<16x64xf32>,
    %c0_i32_8 = arith.constant 0 : i32
    %9 = arith.cmpi eq, %arg2, %c0_i32_8 : i32
    %10 = arith.extui %9 : i1 to i32
    %c0_i32_9 = arith.constant 0 : i32
    %11 = arith.cmpi ne, %10, %c0_i32_9 : i32
    scf.if %11 {
      %c0_10 = arith.constant 0 : index
      %c0_11 = arith.constant 0 : index
      %12 = vector.load %arg7[%c0_10, %c0_11] : memref<16x64xf32, #tpu.memory_space<vmem>>, vector<16x64xf32>
      %c0_12 = arith.constant 0 : index
      %c0_13 = arith.constant 0 : index
      %13 = vector.load %arg5[%c0_12, %c0_13] : memref<1x64xf32, #tpu.memory_space<vmem>>, vector<1x64xf32>
      %14 = vector.broadcast %13 : vector<1x64xf32> to vector<16x64xf32>
      %15 = arith.addf %12, %14 : vector<16x64xf32>
      %c0_14 = arith.constant 0 : index
      %c0_15 = arith.constant 0 : index
      %16 = vector.load %arg6[%c0_14, %c0_15] : memref<16x64xf32, #tpu.memory_space<vmem>>, vector<16x64xf32>
      tpu.vector_store %arg6[%c0_14, %c0_15], %15 {strides = array<i32>} : memref<16x64xf32, #tpu.memory_space<vmem>>, vector<16x64xf32>,
    } else {
    }
    return
  }
  func.func @transform_0(%arg0: i32, %arg1: i32, %arg2: i32) -> (i32, i32) {
    %c0_i32 = arith.constant 0 : i32
    return %arg0, %arg2 : i32, i32
  }
  func.func @transform_1(%arg0: i32, %arg1: i32, %arg2: i32) -> (i32, i32) {
    %c0_i32 = arith.constant 0 : i32
    return %arg1, %arg2 : i32, i32
  }
  func.func @transform_2(%arg0: i32, %arg1: i32, %arg2: i32) -> (i32, i32) {
    %c0_i32 = arith.constant 0 : i32
    %c0_i32_0 = arith.constant 0 : i32
    return %c0_i32, %arg1 : i32, i32
  }
  func.func @transform_3(%arg0: i32, %arg1: i32, %arg2: i32) -> (i32, i32) {
    %c0_i32 = arith.constant 0 : i32
    return %arg0, %arg1 : i32, i32
  }
}

module attributes {stable_mosaic.version = 11 : i64} {
  func.func @kernel(%arg0: i32, %arg1: i32, %arg2: i32, %arg3: memref<8x32xf32, #tpu.memory_space<vmem>>, %arg4: memref<8x16xf32, #tpu.memory_space<vmem>>, %arg5: memref<8x16xf32, #tpu.memory_space<vmem>>, %arg6: memref<8x32xf32, #tpu.memory_space<vmem>>, %arg7: memref<8x4xf32, #tpu.memory_space<vmem>>, %arg8: memref<8x4xf32, #tpu.memory_space<vmem>>, %arg9: memref<4x8x8xf32, #tpu.memory_space<vmem>>) attributes {dimension_semantics = [#tpu.dimension_semantics<parallel>, #tpu.dimension_semantics<parallel>, #tpu.dimension_semantics<arbitrary>], iteration_bounds = array<i64: 2, 1, 1>, scalar_prefetch = 0 : i64, scratch_operands = 3 : i64, tpu.core_type = #tpu.core_type<tc>, window_params = [{transform_indices = @transform_0, window_bounds = array<i64: 8, 32>}, {transform_indices = @transform_1, window_bounds = array<i64: 8, 16>}, {transform_indices = @transform_2, window_bounds = array<i64: 8, 16>}, {transform_indices = @transform_3, window_bounds = array<i64: 8, 32>}]} {
    %c0_i32 = arith.constant 0 : i32
    %0 = arith.cmpi eq, %arg2, %c0_i32 : i32
    %1 = arith.extui %0 : i1 to i32
    %c0_i32_0 = arith.constant 0 : i32
    %2 = arith.cmpi ne, %1, %c0_i32_0 : i32
    scf.if %2 {
      %cst_79 = arith.constant 0xFF800000 : f32
      %124 = vector.broadcast %cst_79 : f32 to vector<8x4xf32>
      %c0_80 = arith.constant 0 : index
      %c0_81 = arith.constant 0 : index
      %125 = vector.load %arg7[%c0_80, %c0_81] : memref<8x4xf32, #tpu.memory_space<vmem>>, vector<8x4xf32>
      tpu.vector_store %arg7[%c0_80, %c0_81], %124 {strides = array<i32>} : memref<8x4xf32, #tpu.memory_space<vmem>>, vector<8x4xf32>,
      %cst_82 = arith.constant 0.000000e+00 : f32
      %126 = vector.broadcast %cst_82 : f32 to vector<8x4xf32>
      %c0_83 = arith.constant 0 : index
      %c0_84 = arith.constant 0 : index
      %127 = vector.load %arg8[%c0_83, %c0_84] : memref<8x4xf32, #tpu.memory_space<vmem>>, vector<8x4xf32>
      tpu.vector_store %arg8[%c0_83, %c0_84], %126 {strides = array<i32>} : memref<8x4xf32, #tpu.memory_space<vmem>>, vector<8x4xf32>,
      %cst_85 = arith.constant 0.000000e+00 : f32
      %128 = vector.broadcast %cst_85 : f32 to vector<4x8x8xf32>
      %c0_86 = arith.constant 0 : index
      %c0_87 = arith.constant 0 : index
      %c0_88 = arith.constant 0 : index
      %129 = vector.load %arg9[%c0_86, %c0_87, %c0_88] : memref<4x8x8xf32, #tpu.memory_space<vmem>>, vector<4x8x8xf32>
      tpu.vector_store %arg9[%c0_86, %c0_87, %c0_88], %128 {strides = array<i32>} : memref<4x8x8xf32, #tpu.memory_space<vmem>>, vector<4x8x8xf32>,
    } else {
    }
    %c0 = arith.constant 0 : index
    %c0_1 = arith.constant 0 : index
    %3 = vector.load %arg4[%c0, %c0_1] : memref<8x16xf32, #tpu.memory_space<vmem>>, vector<8x16xf32>
    %c0_2 = arith.constant 0 : index
    %c0_3 = arith.constant 0 : index
    %4 = vector.load %arg5[%c0_2, %c0_3] : memref<8x16xf32, #tpu.memory_space<vmem>>, vector<8x16xf32>
    %c0_4 = arith.constant 0 : index
    %c0_5 = arith.constant 0 : index
    %5 = vector.load %arg3[%c0_4, %c0_5] : memref<8x32xf32, #tpu.memory_space<vmem>>, vector<8x8xf32>
    %6 = vector.extract_strided_slice %3 {offsets = [0, 0], sizes = [8, 8], strides = [1, 1]} : vector<8x16xf32> to vector<8x8xf32>
    %7 = vector.extract_strided_slice %4 {offsets = [0, 0], sizes = [8, 8], strides = [1, 1]} : vector<8x16xf32> to vector<8x8xf32>
    %cst = arith.constant dense<0.000000e+00> : vector<8x8xf32>
    %8 = tpu.matmul %5, %6, %cst {dimension_numbers = #tpu.dot_dimension_numbers<[1], [1], [0], [0], [0, 0, 1, 0], [], []>} : vector<8x8xf32>, vector<8x8xf32>, vector<8x8xf32> -> vector<8x8xf32>
    %c0_6 = arith.constant 0 : index
    %c0_7 = arith.constant 0 : index
    %9 = vector.load %arg7[%c0_6, %c0_7] : memref<8x4xf32, #tpu.memory_space<vmem>>, vector<8x1xf32>
    %cst_8 = arith.constant dense<0xFF800000> : vector<8xf32>
    %10 = vector.multi_reduction <maximumf>, %8, %cst_8 [1] : vector<8x8xf32> to vector<8xf32>
    %11 = vector.shape_cast %10 : vector<8xf32> to vector<8x1xf32>
    %12 = arith.maximumf %9, %11 : vector<8x1xf32>
    %13 = arith.subf %9, %12 : vector<8x1xf32>
    %14 = math.exp %13 : vector<8x1xf32>
    %15 = vector.broadcast %12 : vector<8x1xf32> to vector<8x8xf32>
    %16 = arith.subf %8, %15 : vector<8x8xf32>
    %17 = math.exp %16 : vector<8x8xf32>
    %c0_9 = arith.constant 0 : index
    %c0_10 = arith.constant 0 : index
    %18 = vector.load %arg8[%c0_9, %c0_10] : memref<8x4xf32, #tpu.memory_space<vmem>>, vector<8x1xf32>
    %19 = arith.mulf %14, %18 : vector<8x1xf32>
    %cst_11 = arith.constant dense<0.000000e+00> : vector<8xf32>
    %20 = vector.multi_reduction <add>, %17, %cst_11 [1] : vector<8x8xf32> to vector<8xf32>
    %21 = vector.shape_cast %20 : vector<8xf32> to vector<8x1xf32>
    %22 = arith.addf %19, %21 : vector<8x1xf32>
    %c0_12 = arith.constant 0 : index
    %c0_13 = arith.constant 0 : index
    %23 = vector.load %arg8[%c0_12, %c0_13] : memref<8x4xf32, #tpu.memory_space<vmem>>, vector<8x1xf32>
    tpu.vector_store %arg8[%c0_12, %c0_13], %22 {strides = array<i32>} : memref<8x4xf32, #tpu.memory_space<vmem>>, vector<8x1xf32>,
    %c0_14 = arith.constant 0 : index
    %c0_15 = arith.constant 0 : index
    %c0_16 = arith.constant 0 : index
    %24 = vector.load %arg9[%c0_14, %c0_15, %c0_16] : memref<4x8x8xf32, #tpu.memory_space<vmem>>, vector<1x8x8xf32>
    %25 = vector.shape_cast %24 : vector<1x8x8xf32> to vector<8x8xf32>
    %26 = vector.broadcast %14 : vector<8x1xf32> to vector<8x8xf32>
    %27 = arith.mulf %26, %25 : vector<8x8xf32>
    %cst_17 = arith.constant dense<0.000000e+00> : vector<8x8xf32>
    %28 = tpu.matmul %17, %7, %cst_17 {dimension_numbers = #tpu.dot_dimension_numbers<[1], [0], [0], [1], [0, 0, 1, 1], [], []>} : vector<8x8xf32>, vector<8x8xf32>, vector<8x8xf32> -> vector<8x8xf32>
    %29 = arith.addf %27, %28 : vector<8x8xf32>
    %c0_18 = arith.constant 0 : index
    %c0_19 = arith.constant 0 : index
    %c0_20 = arith.constant 0 : index
    %30 = vector.load %arg9[%c0_18, %c0_19, %c0_20] : memref<4x8x8xf32, #tpu.memory_space<vmem>>, vector<1x8x8xf32>
    %31 = vector.shape_cast %30 : vector<1x8x8xf32> to vector<8x8xf32>
    %32 = vector.shape_cast %29 : vector<8x8xf32> to vector<1x8x8xf32>
    tpu.vector_store %arg9[%c0_18, %c0_19, %c0_20], %32 {strides = array<i32>} : memref<4x8x8xf32, #tpu.memory_space<vmem>>, vector<1x8x8xf32>,
    %c0_21 = arith.constant 0 : index
    %c0_22 = arith.constant 0 : index
    %33 = vector.load %arg7[%c0_21, %c0_22] : memref<8x4xf32, #tpu.memory_space<vmem>>, vector<8x1xf32>
    tpu.vector_store %arg7[%c0_21, %c0_22], %12 {strides = array<i32>} : memref<8x4xf32, #tpu.memory_space<vmem>>, vector<8x1xf32>,
    %c0_23 = arith.constant 0 : index
    %c8 = arith.constant 8 : index
    %34 = vector.load %arg3[%c0_23, %c8] : memref<8x32xf32, #tpu.memory_space<vmem>>, vector<8x8xf32>
    %35 = vector.extract_strided_slice %3 {offsets = [0, 0], sizes = [8, 8], strides = [1, 1]} : vector<8x16xf32> to vector<8x8xf32>
    %36 = vector.extract_strided_slice %4 {offsets = [0, 0], sizes = [8, 8], strides = [1, 1]} : vector<8x16xf32> to vector<8x8xf32>
    %cst_24 = arith.constant dense<0.000000e+00> : vector<8x8xf32>
    %37 = tpu.matmul %34, %35, %cst_24 {dimension_numbers = #tpu.dot_dimension_numbers<[1], [1], [0], [0], [0, 0, 1, 0], [], []>} : vector<8x8xf32>, vector<8x8xf32>, vector<8x8xf32> -> vector<8x8xf32>
    %c0_25 = arith.constant 0 : index
    %c1 = arith.constant 1 : index
    %38 = vector.load %arg7[%c0_25, %c1] : memref<8x4xf32, #tpu.memory_space<vmem>>, vector<8x1xf32>
    %cst_26 = arith.constant dense<0xFF800000> : vector<8xf32>
    %39 = vector.multi_reduction <maximumf>, %37, %cst_26 [1] : vector<8x8xf32> to vector<8xf32>
    %40 = vector.shape_cast %39 : vector<8xf32> to vector<8x1xf32>
    %41 = arith.maximumf %38, %40 : vector<8x1xf32>
    %42 = arith.subf %38, %41 : vector<8x1xf32>
    %43 = math.exp %42 : vector<8x1xf32>
    %44 = vector.broadcast %41 : vector<8x1xf32> to vector<8x8xf32>
    %45 = arith.subf %37, %44 : vector<8x8xf32>
    %46 = math.exp %45 : vector<8x8xf32>
    %c0_27 = arith.constant 0 : index
    %c1_28 = arith.constant 1 : index
    %47 = vector.load %arg8[%c0_27, %c1_28] : memref<8x4xf32, #tpu.memory_space<vmem>>, vector<8x1xf32>
    %48 = arith.mulf %43, %47 : vector<8x1xf32>
    %cst_29 = arith.constant dense<0.000000e+00> : vector<8xf32>
    %49 = vector.multi_reduction <add>, %46, %cst_29 [1] : vector<8x8xf32> to vector<8xf32>
    %50 = vector.shape_cast %49 : vector<8xf32> to vector<8x1xf32>
    %51 = arith.addf %48, %50 : vector<8x1xf32>
    %c0_30 = arith.constant 0 : index
    %c1_31 = arith.constant 1 : index
    %52 = vector.load %arg8[%c0_30, %c1_31] : memref<8x4xf32, #tpu.memory_space<vmem>>, vector<8x1xf32>
    tpu.vector_store %arg8[%c0_30, %c1_31], %51 {strides = array<i32>} : memref<8x4xf32, #tpu.memory_space<vmem>>, vector<8x1xf32>,
    %c1_32 = arith.constant 1 : index
    %c0_33 = arith.constant 0 : index
    %c0_34 = arith.constant 0 : index
    %53 = vector.load %arg9[%c1_32, %c0_33, %c0_34] : memref<4x8x8xf32, #tpu.memory_space<vmem>>, vector<1x8x8xf32>
    %54 = vector.shape_cast %53 : vector<1x8x8xf32> to vector<8x8xf32>
    %55 = vector.broadcast %43 : vector<8x1xf32> to vector<8x8xf32>
    %56 = arith.mulf %55, %54 : vector<8x8xf32>
    %cst_35 = arith.constant dense<0.000000e+00> : vector<8x8xf32>
    %57 = tpu.matmul %46, %36, %cst_35 {dimension_numbers = #tpu.dot_dimension_numbers<[1], [0], [0], [1], [0, 0, 1, 1], [], []>} : vector<8x8xf32>, vector<8x8xf32>, vector<8x8xf32> -> vector<8x8xf32>
    %58 = arith.addf %56, %57 : vector<8x8xf32>
    %c1_36 = arith.constant 1 : index
    %c0_37 = arith.constant 0 : index
    %c0_38 = arith.constant 0 : index
    %59 = vector.load %arg9[%c1_36, %c0_37, %c0_38] : memref<4x8x8xf32, #tpu.memory_space<vmem>>, vector<1x8x8xf32>
    %60 = vector.shape_cast %59 : vector<1x8x8xf32> to vector<8x8xf32>
    %61 = vector.shape_cast %58 : vector<8x8xf32> to vector<1x8x8xf32>
    tpu.vector_store %arg9[%c1_36, %c0_37, %c0_38], %61 {strides = array<i32>} : memref<4x8x8xf32, #tpu.memory_space<vmem>>, vector<1x8x8xf32>,
    %c0_39 = arith.constant 0 : index
    %c1_40 = arith.constant 1 : index
    %62 = vector.load %arg7[%c0_39, %c1_40] : memref<8x4xf32, #tpu.memory_space<vmem>>, vector<8x1xf32>
    tpu.vector_store %arg7[%c0_39, %c1_40], %41 {strides = array<i32>} : memref<8x4xf32, #tpu.memory_space<vmem>>, vector<8x1xf32>,
    %c0_41 = arith.constant 0 : index
    %c16 = arith.constant 16 : index
    %63 = vector.load %arg3[%c0_41, %c16] : memref<8x32xf32, #tpu.memory_space<vmem>>, vector<8x8xf32>
    %64 = vector.extract_strided_slice %3 {offsets = [0, 8], sizes = [8, 8], strides = [1, 1]} : vector<8x16xf32> to vector<8x8xf32>
    %65 = vector.extract_strided_slice %4 {offsets = [0, 8], sizes = [8, 8], strides = [1, 1]} : vector<8x16xf32> to vector<8x8xf32>
    %cst_42 = arith.constant dense<0.000000e+00> : vector<8x8xf32>
    %66 = tpu.matmul %63, %64, %cst_42 {dimension_numbers = #tpu.dot_dimension_numbers<[1], [1], [0], [0], [0, 0, 1, 0], [], []>} : vector<8x8xf32>, vector<8x8xf32>, vector<8x8xf32> -> vector<8x8xf32>
    %c0_43 = arith.constant 0 : index
    %c2 = arith.constant 2 : index
    %67 = vector.load %arg7[%c0_43, %c2] : memref<8x4xf32, #tpu.memory_space<vmem>>, vector<8x1xf32>
    %cst_44 = arith.constant dense<0xFF800000> : vector<8xf32>
    %68 = vector.multi_reduction <maximumf>, %66, %cst_44 [1] : vector<8x8xf32> to vector<8xf32>
    %69 = vector.shape_cast %68 : vector<8xf32> to vector<8x1xf32>
    %70 = arith.maximumf %67, %69 : vector<8x1xf32>
    %71 = arith.subf %67, %70 : vector<8x1xf32>
    %72 = math.exp %71 : vector<8x1xf32>
    %73 = vector.broadcast %70 : vector<8x1xf32> to vector<8x8xf32>
    %74 = arith.subf %66, %73 : vector<8x8xf32>
    %75 = math.exp %74 : vector<8x8xf32>
    %c0_45 = arith.constant 0 : index
    %c2_46 = arith.constant 2 : index
    %76 = vector.load %arg8[%c0_45, %c2_46] : memref<8x4xf32, #tpu.memory_space<vmem>>, vector<8x1xf32>
    %77 = arith.mulf %72, %76 : vector<8x1xf32>
    %cst_47 = arith.constant dense<0.000000e+00> : vector<8xf32>
    %78 = vector.multi_reduction <add>, %75, %cst_47 [1] : vector<8x8xf32> to vector<8xf32>
    %79 = vector.shape_cast %78 : vector<8xf32> to vector<8x1xf32>
    %80 = arith.addf %77, %79 : vector<8x1xf32>
    %c0_48 = arith.constant 0 : index
    %c2_49 = arith.constant 2 : index
    %81 = vector.load %arg8[%c0_48, %c2_49] : memref<8x4xf32, #tpu.memory_space<vmem>>, vector<8x1xf32>
    tpu.vector_store %arg8[%c0_48, %c2_49], %80 {strides = array<i32>} : memref<8x4xf32, #tpu.memory_space<vmem>>, vector<8x1xf32>,
    %c2_50 = arith.constant 2 : index
    %c0_51 = arith.constant 0 : index
    %c0_52 = arith.constant 0 : index
    %82 = vector.load %arg9[%c2_50, %c0_51, %c0_52] : memref<4x8x8xf32, #tpu.memory_space<vmem>>, vector<1x8x8xf32>
    %83 = vector.shape_cast %82 : vector<1x8x8xf32> to vector<8x8xf32>
    %84 = vector.broadcast %72 : vector<8x1xf32> to vector<8x8xf32>
    %85 = arith.mulf %84, %83 : vector<8x8xf32>
    %cst_53 = arith.constant dense<0.000000e+00> : vector<8x8xf32>
    %86 = tpu.matmul %75, %65, %cst_53 {dimension_numbers = #tpu.dot_dimension_numbers<[1], [0], [0], [1], [0, 0, 1, 1], [], []>} : vector<8x8xf32>, vector<8x8xf32>, vector<8x8xf32> -> vector<8x8xf32>
    %87 = arith.addf %85, %86 : vector<8x8xf32>
    %c2_54 = arith.constant 2 : index
    %c0_55 = arith.constant 0 : index
    %c0_56 = arith.constant 0 : index
    %88 = vector.load %arg9[%c2_54, %c0_55, %c0_56] : memref<4x8x8xf32, #tpu.memory_space<vmem>>, vector<1x8x8xf32>
    %89 = vector.shape_cast %88 : vector<1x8x8xf32> to vector<8x8xf32>
    %90 = vector.shape_cast %87 : vector<8x8xf32> to vector<1x8x8xf32>
    tpu.vector_store %arg9[%c2_54, %c0_55, %c0_56], %90 {strides = array<i32>} : memref<4x8x8xf32, #tpu.memory_space<vmem>>, vector<1x8x8xf32>,
    %c0_57 = arith.constant 0 : index
    %c2_58 = arith.constant 2 : index
    %91 = vector.load %arg7[%c0_57, %c2_58] : memref<8x4xf32, #tpu.memory_space<vmem>>, vector<8x1xf32>
    tpu.vector_store %arg7[%c0_57, %c2_58], %70 {strides = array<i32>} : memref<8x4xf32, #tpu.memory_space<vmem>>, vector<8x1xf32>,
    %c0_59 = arith.constant 0 : index
    %c24 = arith.constant 24 : index
    %92 = vector.load %arg3[%c0_59, %c24] : memref<8x32xf32, #tpu.memory_space<vmem>>, vector<8x8xf32>
    %93 = vector.extract_strided_slice %3 {offsets = [0, 8], sizes = [8, 8], strides = [1, 1]} : vector<8x16xf32> to vector<8x8xf32>
    %94 = vector.extract_strided_slice %4 {offsets = [0, 8], sizes = [8, 8], strides = [1, 1]} : vector<8x16xf32> to vector<8x8xf32>
    %cst_60 = arith.constant dense<0.000000e+00> : vector<8x8xf32>
    %95 = tpu.matmul %92, %93, %cst_60 {dimension_numbers = #tpu.dot_dimension_numbers<[1], [1], [0], [0], [0, 0, 1, 0], [], []>} : vector<8x8xf32>, vector<8x8xf32>, vector<8x8xf32> -> vector<8x8xf32>
    %c0_61 = arith.constant 0 : index
    %c3 = arith.constant 3 : index
    %96 = vector.load %arg7[%c0_61, %c3] : memref<8x4xf32, #tpu.memory_space<vmem>>, vector<8x1xf32>
    %cst_62 = arith.constant dense<0xFF800000> : vector<8xf32>
    %97 = vector.multi_reduction <maximumf>, %95, %cst_62 [1] : vector<8x8xf32> to vector<8xf32>
    %98 = vector.shape_cast %97 : vector<8xf32> to vector<8x1xf32>
    %99 = arith.maximumf %96, %98 : vector<8x1xf32>
    %100 = arith.subf %96, %99 : vector<8x1xf32>
    %101 = math.exp %100 : vector<8x1xf32>
    %102 = vector.broadcast %99 : vector<8x1xf32> to vector<8x8xf32>
    %103 = arith.subf %95, %102 : vector<8x8xf32>
    %104 = math.exp %103 : vector<8x8xf32>
    %c0_63 = arith.constant 0 : index
    %c3_64 = arith.constant 3 : index
    %105 = vector.load %arg8[%c0_63, %c3_64] : memref<8x4xf32, #tpu.memory_space<vmem>>, vector<8x1xf32>
    %106 = arith.mulf %101, %105 : vector<8x1xf32>
    %cst_65 = arith.constant dense<0.000000e+00> : vector<8xf32>
    %107 = vector.multi_reduction <add>, %104, %cst_65 [1] : vector<8x8xf32> to vector<8xf32>
    %108 = vector.shape_cast %107 : vector<8xf32> to vector<8x1xf32>
    %109 = arith.addf %106, %108 : vector<8x1xf32>
    %c0_66 = arith.constant 0 : index
    %c3_67 = arith.constant 3 : index
    %110 = vector.load %arg8[%c0_66, %c3_67] : memref<8x4xf32, #tpu.memory_space<vmem>>, vector<8x1xf32>
    tpu.vector_store %arg8[%c0_66, %c3_67], %109 {strides = array<i32>} : memref<8x4xf32, #tpu.memory_space<vmem>>, vector<8x1xf32>,
    %c3_68 = arith.constant 3 : index
    %c0_69 = arith.constant 0 : index
    %c0_70 = arith.constant 0 : index
    %111 = vector.load %arg9[%c3_68, %c0_69, %c0_70] : memref<4x8x8xf32, #tpu.memory_space<vmem>>, vector<1x8x8xf32>
    %112 = vector.shape_cast %111 : vector<1x8x8xf32> to vector<8x8xf32>
    %113 = vector.broadcast %101 : vector<8x1xf32> to vector<8x8xf32>
    %114 = arith.mulf %113, %112 : vector<8x8xf32>
    %cst_71 = arith.constant dense<0.000000e+00> : vector<8x8xf32>
    %115 = tpu.matmul %104, %94, %cst_71 {dimension_numbers = #tpu.dot_dimension_numbers<[1], [0], [0], [1], [0, 0, 1, 1], [], []>} : vector<8x8xf32>, vector<8x8xf32>, vector<8x8xf32> -> vector<8x8xf32>
    %116 = arith.addf %114, %115 : vector<8x8xf32>
    %c3_72 = arith.constant 3 : index
    %c0_73 = arith.constant 0 : index
    %c0_74 = arith.constant 0 : index
    %117 = vector.load %arg9[%c3_72, %c0_73, %c0_74] : memref<4x8x8xf32, #tpu.memory_space<vmem>>, vector<1x8x8xf32>
    %118 = vector.shape_cast %117 : vector<1x8x8xf32> to vector<8x8xf32>
    %119 = vector.shape_cast %116 : vector<8x8xf32> to vector<1x8x8xf32>
    tpu.vector_store %arg9[%c3_72, %c0_73, %c0_74], %119 {strides = array<i32>} : memref<4x8x8xf32, #tpu.memory_space<vmem>>, vector<1x8x8xf32>,
    %c0_75 = arith.constant 0 : index
    %c3_76 = arith.constant 3 : index
    %120 = vector.load %arg7[%c0_75, %c3_76] : memref<8x4xf32, #tpu.memory_space<vmem>>, vector<8x1xf32>
    tpu.vector_store %arg7[%c0_75, %c3_76], %99 {strides = array<i32>} : memref<8x4xf32, #tpu.memory_space<vmem>>, vector<8x1xf32>,
    %c0_i32_77 = arith.constant 0 : i32
    %121 = arith.cmpi eq, %arg2, %c0_i32_77 : i32
    %122 = arith.extui %121 : i1 to i32
    %c0_i32_78 = arith.constant 0 : i32
    %123 = arith.cmpi ne, %122, %c0_i32_78 : i32
    scf.if %123 {
      %c0_79 = arith.constant 0 : index
      %c0_80 = arith.constant 0 : index
      %124 = vector.load %arg8[%c0_79, %c0_80] : memref<8x4xf32, #tpu.memory_space<vmem>>, vector<8x1xf32>
      %125 = tpu.reciprocal %124 {approx = true} : vector<8x1xf32> -> vector<8x1xf32>
      %c0_81 = arith.constant 0 : index
      %c0_82 = arith.constant 0 : index
      %c0_83 = arith.constant 0 : index
      %126 = vector.load %arg9[%c0_81, %c0_82, %c0_83] : memref<4x8x8xf32, #tpu.memory_space<vmem>>, vector<1x8x8xf32>
      %127 = vector.shape_cast %126 : vector<1x8x8xf32> to vector<8x8xf32>
      %128 = vector.broadcast %125 : vector<8x1xf32> to vector<8x8xf32>
      %129 = arith.mulf %127, %128 : vector<8x8xf32>
      %c0_84 = arith.constant 0 : index
      %c0_85 = arith.constant 0 : index
      %130 = vector.load %arg6[%c0_84, %c0_85] : memref<8x32xf32, #tpu.memory_space<vmem>>, vector<8x8xf32>
      tpu.vector_store %arg6[%c0_84, %c0_85], %129 {strides = array<i32>} : memref<8x32xf32, #tpu.memory_space<vmem>>, vector<8x8xf32>,
      %c0_86 = arith.constant 0 : index
      %c1_87 = arith.constant 1 : index
      %131 = vector.load %arg8[%c0_86, %c1_87] : memref<8x4xf32, #tpu.memory_space<vmem>>, vector<8x1xf32>
      %132 = tpu.reciprocal %131 {approx = true} : vector<8x1xf32> -> vector<8x1xf32>
      %c1_88 = arith.constant 1 : index
      %c0_89 = arith.constant 0 : index
      %c0_90 = arith.constant 0 : index
      %133 = vector.load %arg9[%c1_88, %c0_89, %c0_90] : memref<4x8x8xf32, #tpu.memory_space<vmem>>, vector<1x8x8xf32>
      %134 = vector.shape_cast %133 : vector<1x8x8xf32> to vector<8x8xf32>
      %135 = vector.broadcast %132 : vector<8x1xf32> to vector<8x8xf32>
      %136 = arith.mulf %134, %135 : vector<8x8xf32>
      %c0_91 = arith.constant 0 : index
      %c8_92 = arith.constant 8 : index
      %137 = vector.load %arg6[%c0_91, %c8_92] : memref<8x32xf32, #tpu.memory_space<vmem>>, vector<8x8xf32>
      tpu.vector_store %arg6[%c0_91, %c8_92], %136 {strides = array<i32>} : memref<8x32xf32, #tpu.memory_space<vmem>>, vector<8x8xf32>,
      %c0_93 = arith.constant 0 : index
      %c2_94 = arith.constant 2 : index
      %138 = vector.load %arg8[%c0_93, %c2_94] : memref<8x4xf32, #tpu.memory_space<vmem>>, vector<8x1xf32>
      %139 = tpu.reciprocal %138 {approx = true} : vector<8x1xf32> -> vector<8x1xf32>
      %c2_95 = arith.constant 2 : index
      %c0_96 = arith.constant 0 : index
      %c0_97 = arith.constant 0 : index
      %140 = vector.load %arg9[%c2_95, %c0_96, %c0_97] : memref<4x8x8xf32, #tpu.memory_space<vmem>>, vector<1x8x8xf32>
      %141 = vector.shape_cast %140 : vector<1x8x8xf32> to vector<8x8xf32>
      %142 = vector.broadcast %139 : vector<8x1xf32> to vector<8x8xf32>
      %143 = arith.mulf %141, %142 : vector<8x8xf32>
      %c0_98 = arith.constant 0 : index
      %c16_99 = arith.constant 16 : index
      %144 = vector.load %arg6[%c0_98, %c16_99] : memref<8x32xf32, #tpu.memory_space<vmem>>, vector<8x8xf32>
      tpu.vector_store %arg6[%c0_98, %c16_99], %143 {strides = array<i32>} : memref<8x32xf32, #tpu.memory_space<vmem>>, vector<8x8xf32>,
      %c0_100 = arith.constant 0 : index
      %c3_101 = arith.constant 3 : index
      %145 = vector.load %arg8[%c0_100, %c3_101] : memref<8x4xf32, #tpu.memory_space<vmem>>, vector<8x1xf32>
      %146 = tpu.reciprocal %145 {approx = true} : vector<8x1xf32> -> vector<8x1xf32>
      %c3_102 = arith.constant 3 : index
      %c0_103 = arith.constant 0 : index
      %c0_104 = arith.constant 0 : index
      %147 = vector.load %arg9[%c3_102, %c0_103, %c0_104] : memref<4x8x8xf32, #tpu.memory_space<vmem>>, vector<1x8x8xf32>
      %148 = vector.shape_cast %147 : vector<1x8x8xf32> to vector<8x8xf32>
      %149 = vector.broadcast %146 : vector<8x1xf32> to vector<8x8xf32>
      %150 = arith.mulf %148, %149 : vector<8x8xf32>
      %c0_105 = arith.constant 0 : index
      %c24_106 = arith.constant 24 : index
      %151 = vector.load %arg6[%c0_105, %c24_106] : memref<8x32xf32, #tpu.memory_space<vmem>>, vector<8x8xf32>
      tpu.vector_store %arg6[%c0_105, %c24_106], %150 {strides = array<i32>} : memref<8x32xf32, #tpu.memory_space<vmem>>, vector<8x8xf32>,
    } else {
    }
    return
  }
  func.func @transform_0(%arg0: i32, %arg1: i32, %arg2: i32) -> (i32, i32) {
    %c1_i32 = arith.constant 1 : i32
    %0 = arith.muli %arg0, %c1_i32 : i32
    %1 = arith.addi %0, %arg1 : i32
    %c0_i32 = arith.constant 0 : i32
    %c0_i32_0 = arith.constant 0 : i32
    return %1, %c0_i32 : i32, i32
  }
  func.func @transform_1(%arg0: i32, %arg1: i32, %arg2: i32) -> (i32, i32) {
    %c1_i32 = arith.constant 1 : i32
    %0 = arith.muli %arg0, %c1_i32 : i32
    %1 = arith.addi %0, %arg2 : i32
    %c0_i32 = arith.constant 0 : i32
    %c0_i32_0 = arith.constant 0 : i32
    return %1, %c0_i32 : i32, i32
  }
  func.func @transform_2(%arg0: i32, %arg1: i32, %arg2: i32) -> (i32, i32) {
    %c1_i32 = arith.constant 1 : i32
    %0 = arith.muli %arg0, %c1_i32 : i32
    %1 = arith.addi %0, %arg2 : i32
    %c0_i32 = arith.constant 0 : i32
    %c0_i32_0 = arith.constant 0 : i32
    return %1, %c0_i32 : i32, i32
  }
  func.func @transform_3(%arg0: i32, %arg1: i32, %arg2: i32) -> (i32, i32) {
    %c1_i32 = arith.constant 1 : i32
    %0 = arith.muli %arg0, %c1_i32 : i32
    %1 = arith.addi %0, %arg1 : i32
    %c0_i32 = arith.constant 0 : i32
    %c0_i32_0 = arith.constant 0 : i32
    return %1, %c0_i32 : i32, i32
  }
}

module attributes {stable_mosaic.version = 11 : i64} {
  func.func @_linear_kernel(%arg0: i32, %arg1: i32, %arg2: i32, %arg3: memref<16x32xf32, #tpu.memory_space<vmem>>, %arg4: memref<32x32xf32, #tpu.memory_space<vmem>>, %arg5: memref<1x32xf32, #tpu.memory_space<vmem>>, %arg6: memref<16x32xf32, #tpu.memory_space<vmem>>, %arg7: memref<16x32xf32, #tpu.memory_space<vmem>>) attributes {dimension_semantics = [#tpu.dimension_semantics<parallel>, #tpu.dimension_semantics<parallel>, #tpu.dimension_semantics<arbitrary>], iteration_bounds = array<i64: 1, 1, 1>, scalar_prefetch = 0 : i64, scratch_operands = 1 : i64, tpu.core_type = #tpu.core_type<tc>, window_params = [{transform_indices = @transform_0, window_bounds = array<i64: 16, 32>}, {transform_indices = @transform_1, window_bounds = array<i64: 32, 32>}, {transform_indices = @transform_2, window_bounds = array<i64: 1, 32>}, {transform_indices = @transform_3, window_bounds = array<i64: 16, 32>}]} {
    %c0_i32 = arith.constant 0 : i32
    %0 = arith.cmpi eq, %arg2, %c0_i32 : i32
    %1 = arith.extui %0 : i1 to i32
    %c0_i32_0 = arith.constant 0 : i32
    %2 = arith.cmpi ne, %1, %c0_i32_0 : i32
    scf.if %2 {
      %cst_10 = arith.constant 0.000000e+00 : f32
      %12 = vector.broadcast %cst_10 : f32 to vector<16x32xf32>
      %c0_11 = arith.constant 0 : index
      %c0_12 = arith.constant 0 : index
      %13 = vector.load %arg7[%c0_11, %c0_12] : memref<16x32xf32, #tpu.memory_space<vmem>>, vector<16x32xf32>
      tpu.vector_store %arg7[%c0_11, %c0_12], %12 {strides = array<i32>} : memref<16x32xf32, #tpu.memory_space<vmem>>, vector<16x32xf32>,
    } else {
    }
    %c0 = arith.constant 0 : index
    %c0_1 = arith.constant 0 : index
    %3 = vector.load %arg7[%c0, %c0_1] : memref<16x32xf32, #tpu.memory_space<vmem>>, vector<16x32xf32>
    %c0_2 = arith.constant 0 : index
    %c0_3 = arith.constant 0 : index
    %4 = vector.load %arg3[%c0_2, %c0_3] : memref<16x32xf32, #tpu.memory_space<vmem>>, vector<16x32xf32>
    %c0_4 = arith.constant 0 : index
    %c0_5 = arith.constant 0 : index
    %5 = vector.load %arg4[%c0_4, %c0_5] : memref<32x32xf32, #tpu.memory_space<vmem>>, vector<32x32xf32>
    %cst = arith.constant dense<0.000000e+00> : vector<16x32xf32>
    %6 = tpu.matmul %4, %5, %cst {dimension_numbers = #tpu.dot_dimension_numbers<[1], [1], [0], [0], [0, 0, 1, 0], [], []>} : vector<16x32xf32>, vector<32x32xf32>, vector<16x32xf32> -> vector<16x32xf32>
    %7 = arith.addf %3, %6 : vector<16x32xf32>
    %c0_6 = arith.constant 0 : index
    %c0_7 = arith.constant 0 : index
    %8 = vector.load %arg7[%c0_6, %c0_7] : memref<16x32xf32, #tpu.memory_space<vmem>>, vector<16x32xf32>
    tpu.vector_store %arg7[%c0_6, %c0_7], %7 {strides = array<i32>} : memref<16x32xf32, #tpu.memory_space<vmem>>, vector<16x32xf32>,
    %c0_i32_8 = arith.constant 0 : i32
    %9 = arith.cmpi eq, %arg2, %c0_i32_8 : i32
    %10 = arith.extui %9 : i1 to i32
    %c0_i32_9 = arith.constant 0 : i32
    %11 = arith.cmpi ne, %10, %c0_i32_9 : i32
    scf.if %11 {
      %c0_10 = arith.constant 0 : index
      %c0_11 = arith.constant 0 : index
      %12 = vector.load %arg7[%c0_10, %c0_11] : memref<16x32xf32, #tpu.memory_space<vmem>>, vector<16x32xf32>
      %c0_12 = arith.constant 0 : index
      %c0_13 = arith.constant 0 : index
      %13 = vector.load %arg5[%c0_12, %c0_13] : memref<1x32xf32, #tpu.memory_space<vmem>>, vector<1x32xf32>
      %14 = vector.broadcast %13 : vector<1x32xf32> to vector<16x32xf32>
      %15 = arith.addf %12, %14 : vector<16x32xf32>
      %c0_14 = arith.constant 0 : index
      %c0_15 = arith.constant 0 : index
      %16 = vector.load %arg6[%c0_14, %c0_15] : memref<16x32xf32, #tpu.memory_space<vmem>>, vector<16x32xf32>
      tpu.vector_store %arg6[%c0_14, %c0_15], %15 {strides = array<i32>} : memref<16x32xf32, #tpu.memory_space<vmem>>, vector<16x32xf32>,
    } else {
    }
    return
  }
  func.func @transform_0(%arg0: i32, %arg1: i32, %arg2: i32) -> (i32, i32) {
    %c0_i32 = arith.constant 0 : i32
    return %arg0, %arg2 : i32, i32
  }
  func.func @transform_1(%arg0: i32, %arg1: i32, %arg2: i32) -> (i32, i32) {
    %c0_i32 = arith.constant 0 : i32
    return %arg1, %arg2 : i32, i32
  }
  func.func @transform_2(%arg0: i32, %arg1: i32, %arg2: i32) -> (i32, i32) {
    %c0_i32 = arith.constant 0 : i32
    %c0_i32_0 = arith.constant 0 : i32
    return %c0_i32, %arg1 : i32, i32
  }
  func.func @transform_3(%arg0: i32, %arg1: i32, %arg2: i32) -> (i32, i32) {
    %c0_i32 = arith.constant 0 : i32
    return %arg0, %arg1 : i32, i32
  }
}

</mosaic_0001>

<bundles_post_ra>
// kernel: gqa_forward.5
= control target key start
LH: loop header
LB: loop body
LE: loop exit
PB: predicated region body
PF: predicated region fallthrough
CT: control target
= control target key end

     0   :  { %vm19_vm0 = vcmask 261120   ;;  %v148_v1 = vmov 0.0   ;;  %s212_s0 = inlined_call_operand.vmem [shape: f32[16,32], index: 0, kind: input, shape index: {}]   ;;  %s213_s1 = inlined_call_operand.vmem [shape: f32[32,32], index: 1, kind: input, shape index: {}]   ;;  %s214_s2 = inlined_call_operand.vmem [shape: f32[1,32], index: 2, kind: input, shape index: {}]   ;;  %s215_s3 = inlined_call_operand.hbm [shape: f32[16,32], index: 3, kind: output, shape index: {}]  }
   0x1   :  { %v29_v0 = vld [vmem:[%s213_s1 + $0x18] sm:$0xff]  ;;  %20 = vst.msk [vmem:[#allocation2] sm:$0xff] %vm19_vm0, %v148_v1  ;;  %v28_v2 = vld [vmem:[%s213_s1 + $0x10] sm:$0xff] }
   0x2   :  { %107 = vmatpush.xpose.msk.msra.mxu0 %vm19_vm0, %v29_v0  ;;  %113 = vmatpush.xpose.msk.msra.mxu1 %vm19_vm0, %v29_v0  ;;  %21 = vst.msk [vmem:[#allocation2 + $0x8] sm:$0xff] %vm19_vm0, %v148_v1 }
   0x3   :  { %8 = vsyncpa [#allocation4], 0  ;;  %v27_v3 = vld [vmem:[%s213_s1 + $0x8] sm:$0xff]  ;;  %v26_v4 = vld [vmem:[%s213_s1] sm:$0xff]  ;;  %s149_s25 = smov [#allocation3]   ;;  %s95_s28 = sshll.u32 %s215_s3, 4  ;;  %s96_s28 = int_to_ptr.hbm [resolvable:$true] %s95_s28 }
   0x4   :  { %v24_v5 = vld [vmem:[%s212_s0] sm:$0xff]  ;;  %v25_v6 = vld [vmem:[%s212_s0 + $0x8] sm:$0xff]  ;;  %s93_s0 = sshll.u32 %s149_s25, 4  ;;  %s150_s29 = smov 128   ;;  %s94_s0 = int_to_ptr.vmem [resolvable:$true] %s93_s0 }
   0x5   :  { %v121_v13 = vld [vmem:[%s214_s2] ss:$0 sm:$0xff]  ;;  %s151_s30 = smov 8  }
   0x6   :  { %108 = vmatpush.xpose.msk.msra.mxu0 %vm19_vm0, %v28_v2  ;;  %114 = vmatpush.xpose.msk.msra.mxu1 %vm19_vm0, %v28_v2 }
   0x8   :  { %v22_v7 = vld [vmem:[#allocation2] sm:$0xff] }
   0x9   :  { %v23_v8 = vld [vmem:[#allocation2 + $0x8] sm:$0xff] }
   0xa   :  { %109 = vmatpush.xpose.msk.msra.mxu0 %vm19_vm0, %v27_v3  ;;  %115 = vmatpush.xpose.msk.msra.mxu1 %vm19_vm0, %v27_v3 }
   0xe   :  { %110 = vmatpush.xpose.msk.msra.mxu0 %vm19_vm0, %v26_v4  ;;  %116 = vmatpush.xpose.msk.msra.mxu1 %vm19_vm0, %v26_v4 }
  0x11   :  { %111 = vmatmul.msk.f32.vlgmr.msra.gmra.mxu0 %vm19_vm0, %v24_v5  ;;  %112 = vmatmul.msk.f32.vlgmr.msra.gmra.mxu1 %vm19_vm0, %v25_v6 }
  0x8e   :  { %v66_v9 = vpop.f32.mrf.mxu0  ;;  %v69_v10 = vpop.f32.mrf.mxu1 }
  0x8f   :  { %v72_v11 = vadd.f32 %v66_v9, %v22_v7  ;;  %v73_v12 = vadd.f32 %v69_v10, %v23_v8 }
  0x91   :  { %74 = vst.msk [vmem:[#allocation2] sm:$0xff] %vm19_vm0, %v72_v11 }
  0x92   :  { %75 = vst.msk [vmem:[#allocation2 + $0x8] sm:$0xff] %vm19_vm0, %v73_v12 }
  0x98   :  { %v79_v14 = vld [vmem:[#allocation2] sm:$0xff] }
  0x99   :  { %v80_v15 = vld [vmem:[#allocation2 + $0x8] sm:$0xff]  ;;  %v85_v16 = vadd.f32 %v121_v13, %v79_v14 }
  0x9a   :  { %v86_v17 = vadd.f32 %v121_v13, %v80_v15 }
  0x9b   :  { %87 = vst.msk [vmem:[#allocation3] sm:$0xff] %vm19_vm0, %v85_v16 }
  0x9c   :  { %88 = vst.msk [vmem:[#allocation3 + $0x8] sm:$0xff] %vm19_vm0, %v86_v17 }
  0x9d   :  { %101 = dma.vmem_to_hbm [thread:$0]  %s94_s0, 256, %s96_s28, [#allocation4], %s150_s29, %s150_s29, %s151_s30  }
  0x9e   :  { %146 = dma.done.wait [#allocation4], 256  }
  0x9f   :  { %147 = vsyncadd [#allocation4], 4294967040 }
  0xa0   :  { %106 = vsyncpa [#allocation4], 1 }

// kernel: gqa_forward.3
= control target key start
LH: loop header
LB: loop body
LE: loop exit
PB: predicated region body
PF: predicated region fallthrough
CT: control target
= control target key end

     0   :  { %vm33_vm0 = vcmask 261120   ;;  %vm18_vm1 = vcmask 523264   ;;  %v129_v1 = vmov 0.0   ;;  %s213_s1 = inlined_call_operand.vmem [shape: f32[64,32], index: 1, kind: input, shape index: {}]   ;;  %s214_s2 = inlined_call_operand.vmem [shape: f32[1,64], index: 2, kind: input, shape index: {}]   ;;  %s215_s0 = inlined_call_operand.vmem [shape: f32[16,32], index: 0, kind: input, shape index: {}]   ;;  %s216_s3 = inlined_call_operand.vmem [shape: f32[16,64], index: 3, kind: output, shape index: {}]  }
   0x1   :  { %v32_v0 = vld [vmem:[%s213_s1 + $0x38] sm:$0xff]  ;;  %19 = vst.msk [vmem:[#allocation2] sm:$0xff] %vm18_vm1, %v129_v1  ;;  %v31_v2 = vld [vmem:[%s213_s1 + $0x30] sm:$0xff]  ;;  %v30_v3 = vld [vmem:[%s213_s1 + $0x28] sm:$0xff] }
   0x2   :  { %109 = vmatpush.xpose.msk.msra.mxu0 %vm33_vm0, %v32_v0  ;;  %119 = vmatpush.xpose.msk.msra.mxu1 %vm33_vm0, %v32_v0  ;;  %20 = vst.msk [vmem:[#allocation2 + $0x8] sm:$0xff] %vm18_vm1, %v129_v1  ;;  %v29_v4 = vld [vmem:[%s213_s1 + $0x20] sm:$0xff]  ;;  %v28_v5 = vld [vmem:[%s213_s1 + $0x18] sm:$0xff]  ;;  %v27_v6 = vld [vmem:[%s213_s1 + $0x10] sm:$0xff] }
   0x3   :  { %v26_v7 = vld [vmem:[%s213_s1 + $0x8] sm:$0xff]  ;;  %v25_v8 = vld [vmem:[%s213_s1] sm:$0xff] }
   0x4   :  { %v23_v9 = vld [vmem:[%s215_s0] sm:$0xff]  ;;  %v24_v10 = vld [vmem:[%s215_s0 + $0x8] sm:$0xff] }
   0x5   :  { %v128_v17 = vld [vmem:[%s214_s2] ss:$0 sm:$0xff] }
   0x6   :  { %110 = vmatpush.xpose.msk.msra.mxu0 %vm33_vm0, %v31_v2  ;;  %120 = vmatpush.xpose.msk.msra.mxu1 %vm33_vm0, %v31_v2 }
   0x8   :  { %v21_v11 = vld [vmem:[#allocation2] sm:$0xff] }
   0x9   :  { %v22_v12 = vld [vmem:[#allocation2 + $0x8] sm:$0xff] }
   0xa   :  { %111 = vmatpush.xpose.msk.msra.mxu0 %vm33_vm0, %v30_v3  ;;  %121 = vmatpush.xpose.msk.msra.mxu1 %vm33_vm0, %v30_v3 }
   0xe   :  { %112 = vmatpush.xpose.msk.msra.mxu0 %vm33_vm0, %v29_v4  ;;  %122 = vmatpush.xpose.msk.msra.mxu1 %vm33_vm0, %v29_v4 }
  0x12   :  { %113 = vmatpush.xpose.msk.msra.mxu0 %vm33_vm0, %v28_v5  ;;  %123 = vmatpush.xpose.msk.msra.mxu1 %vm33_vm0, %v28_v5 }
  0x16   :  { %114 = vmatpush.xpose.msk.msra.mxu0 %vm33_vm0, %v27_v6  ;;  %124 = vmatpush.xpose.msk.msra.mxu1 %vm33_vm0, %v27_v6 }
  0x1a   :  { %115 = vmatpush.xpose.msk.msra.mxu0 %vm33_vm0, %v26_v7  ;;  %125 = vmatpush.xpose.msk.msra.mxu1 %vm33_vm0, %v26_v7 }
  0x1e   :  { %116 = vmatpush.xpose.msk.msra.mxu0 %vm33_vm0, %v25_v8  ;;  %126 = vmatpush.xpose.msk.msra.mxu1 %vm33_vm0, %v25_v8 }
  0x21   :  { %117 = vmatmul.msk.f32.vlgmr.msra.gmra.mxu0 %vm33_vm0, %v23_v9  ;;  %118 = vmatmul.msk.f32.vlgmr.msra.gmra.mxu1 %vm33_vm0, %v24_v10 }
  0x9e   :  { %v81_v13 = vpop.f32.mrf.mxu0  ;;  %v84_v14 = vpop.f32.mrf.mxu1 }
  0x9f   :  { %v87_v15 = vadd.f32 %v81_v13, %v21_v11  ;;  %v88_v16 = vadd.f32 %v84_v14, %v22_v12 }
  0xa1   :  { %90 = vst.msk [vmem:[#allocation2] sm:$0xff] %vm18_vm1, %v87_v15 }
  0xa2   :  { %91 = vst.msk [vmem:[#allocation2 + $0x8] sm:$0xff] %vm18_vm1, %v88_v16 }
  0xa8   :  { %v95_v18 = vld [vmem:[#allocation2] sm:$0xff] }
  0xa9   :  { %v101_v19 = vadd.f32 %v128_v17, %v95_v18  ;;  %v96_v20 = vld [vmem:[#allocation2 + $0x8] sm:$0xff] }
  0xaa   :  { %v102_v21 = vadd.f32 %v128_v17, %v96_v20 }
  0xab   :  { %103 = vst.msk [vmem:[%s216_s3] sm:$0xff] %vm18_vm1, %v101_v19 }
  0xac   :  { %104 = vst.msk [vmem:[%s216_s3 + $0x8] sm:$0xff] %vm18_vm1, %v102_v21 }

// kernel: gqa_forward.4
= control target key start
LH: loop header
LB: loop body
LE: loop exit
PB: predicated region body
PF: predicated region fallthrough
CT: control target
= control target key end

     0   :  { %s898_s12 = smov 0   ;;  %s900_s13 = smov 0   ;;  %s1004_s0 = inlined_call_operand.vmem [shape: f32[16,32], index: 0, kind: input, shape index: {}]   ;;  %s1005_s1 = inlined_call_operand.vmem [shape: f32[16,16], index: 1, kind: input, shape index: {}]   ;;  %s1006_s2 = inlined_call_operand.vmem [shape: f32[16,16], index: 2, kind: input, shape index: {}]   ;;  %s1007_s3 = inlined_call_operand.vmem [shape: f32[16,32], index: 3, kind: output, shape index: {}]  }
   0x1   :  { %s902_s14 = smov 0  }
   0x2 LB: > { %s32_s15 = sadd.s32 1, %s860_s13  ;;  %p758_p0 = scmp.ge.s32.totalorder %s864_s14, 1  ;;  %s864_s14 = sphi %s902_s14, %s13_s14   ;;  %s860_s13 = sphi %s900_s13, %s1009_s13   ;;  %s856_s12 = sphi %s898_s12, %s1008_s12  }
   0x3   : > { %p34_p1 = scmp.ge.s32.totalorder %s32_s15, 2  ;;  %p187_p2 = scmp.lt.s32.totalorder %s864_s14, 3 }
   0x5   : > { %s1011_s15 = smov (%p34_p1, %s32_s15), 0  ;;  %p188_p3 = pnand %p758_p0, %p187_p2 }
   0x6   : > { %p222_p4 = scmp.lt.s32.totalorder (!%p188_p3), %s856_s12, 1  ;;  %s866_s23 = smov (!%p188_p3), 120  }
   0x7   : > { %191 = sbr.rel (%p188_p3) target bundleno = 1142 (0x476), region = 32  ;;  %s867_s24 = smov (!%p188_p3), 112  }
   0x8   : > { %s868_s25 = smov (!%p188_p3), 104   ;;  %s875_s29 = smov (!%p188_p3), 8  }
   0x9   : > { %s876_s30 = smov (!%p188_p3), 16   ;;  %s877_s4 = smov (!%p188_p3), 24  }
   0xc   : > { %s1013_s12 = smov (!%p222_p4, %s856_s12), 1  ;;  %vm252_vm0 = vcmask 64512   ;;  %vm249_vm1 = vcmask 31744   ;;  %v869_v2 = vmov -inf   ;;  %v870_v9 = vmov 0  }
   0xd   : > { %s916_s16 = sshll.u32 %s1013_s12, 3  ;;  %250 = vst.msk [vmem:[#allocation2] sm:$0xff] %vm249_vm1, %v869_v2  ;;  %813 = vset.pattern.permute.xlu0 %v870_v9  ;;  %v871_v10 = vmov 0.0   ;;  %vm309_vm2 = vcmask 7168   ;;  %vm392_vm3 = vcmask 15368   ;;  %v872_v29 = vmov 1  }
   0xe   : > { %s231_s19 = scalar_lea.vmem %s1005_s1, %s916_s16  ;;  %s225_s22 = scalar_lea.vmem %s1004_s0, %s916_s16  ;;  %253 = vst.msk [vmem:[#allocation4] sm:$0xff] %vm252_vm0, %v871_v10  ;;  %814 = vset.pattern.permute.xlu2 %v872_v29  ;;  %v873_v38 = vmov 2   ;;  %v874_v39 = vmov 3   ;;  %vm480_vm4 = vcmask 23568   ;;  %vm568_vm5 = vcmask 31768  }
   0xf   : > { %v257_v0 = vld [vmem:[%s231_s19] sm:$0xff]  ;;  %251 = vst.msk [vmem:[#allocation3] sm:$0xff] %vm249_vm1, %v871_v10  ;;  %s237_s28 = scalar_lea.vmem %s1006_s2, %s916_s16  ;;  %815 = vset.pattern.permute.xlu1 %v873_v38  ;;  %s243_s7 = scalar_lea.vmem %s1007_s3, %s916_s16  ;;  %vm630_vm6 = vcmask 130112   ;;  %vm645_vm7 = vcmask 195712   ;;  %vm660_vm8 = vcmask 261312  }
  0x10   : > { %v344_v1 = vld [vmem:[%s225_s22] sm:$0xff]  ;;  %763 = vmatpush.xpose.msk.msra.mxu0 %vm252_vm0, %v257_v0  ;;  %766 = vmatpush.xpose.msk.msra.mxu2 %vm252_vm0, %v257_v0  ;;  %254 = vst.msk [vmem:[#allocation4 + $0x8] sm:$0xff] %vm252_vm0, %v871_v10 }
  0x11   : > { %346 = vrot.lane.b32.xlu1 %v344_v1, %s866_s23  ;;  %430 = vrot.lane.b32.xlu2 %v344_v1, %s867_s24  ;;  %255 = vst.msk [vmem:[#allocation4 + $0x10] sm:$0xff] %vm252_vm0, %v871_v10  ;;  %v258_v21 = vld [vmem:[%s237_s28] sm:$0xff] }
  0x12   : > { %256 = vst.msk [vmem:[#allocation4 + $0x18] sm:$0xff] %vm252_vm0, %v871_v10  ;;  %336 = vmatpush.msra.mxu1 %v258_v21  ;;  %420 = vmatpush.msra.mxu3 %v258_v21 }
  0x13   : > { %764 = vmatmul.msk.f32.vlgmr.msra.gmra.mxu0 %vm252_vm0, %v344_v1 }
  0x14   : > { %v287_v11 = vld [vmem:[#allocation2] sm:$0xff] }
  0x15   : > { %v311_v31 = vld [vmem:[#allocation4] sm:$0xff] }
  0x19   : > { %432 = vrot.lane.b32.xlu1 %v257_v0, %s866_s23  ;;  %522 = vrot.lane.b32.xlu2 %v344_v1, %s868_s25 }
  0x6b   : > { %v431_v3 = vpop.permute.xlu2 %430 }
  0x73   : > { %v523_v6 = vpop.permute.xlu2 %522 }
  0x83   : > { %v347_v4 = vpop.permute.xlu1 %346 }
  0x84   : > { %767 = vmatmul.msk.f32.vlgmr.msra.gmra.mxu2 %vm252_vm0, %v347_v4 }
  0x8b   : > { %v433_v5 = vpop.permute.xlu1 %432 }
  0x8c   : > { %772 = vmatpush.xpose.msk.msrb.mxu0 %vm252_vm0, %v433_v5  ;;  %769 = vmatpush.xpose.msk.msrb.mxu1 %vm252_vm0, %v433_v5 }
  0x8f   : > { %773 = vmatmul.msk.f32.vlgmr.msrb.gmra.mxu0 %vm252_vm0, %v523_v6 }
  0x90   : > { %v284_v7 = vpop.f32.mrf.mxu0 }
  0x91   : > { %v288_v8 = vsel %vm252_vm0, %v284_v7, -inf }
  0x92   : > { %289 = vmax.xlane.f32.xlu0 %v288_v8 }
 0x105   : > { %v290_v12 = vpop.xlane.xlu0 %289 }
 0x106   : > { %v291_v13 = vmax.f32 %v287_v11, %v290_v12 }
 0x107   : > { %v367_v14 = vpop.f32.mrf.mxu2 }
 0x108   : > { %v371_v15 = vsel %vm252_vm0, %v367_v14, -inf  ;;  %343 = vst.msk [vmem:[#allocation2] sm:$0xff] %vm309_vm2, %v291_v13  ;;  %297 = vperm.xlu0 %813, %v291_v13   ;;  %v292_v18 = vsub.f32 %v287_v11, %v291_v13 }
 0x109   : > { %372 = vmax.xlane.f32.xlu1 %v371_v15  ;;  %v395_v15 = vld [vmem:[#allocation4 + $0x8] sm:$0xff] }
 0x10a   : > { %v293_v19 = vmul.f32 1.442695, %v292_v18 }
 0x10c   : > { %v944_v16 = vpop.f32.mrf.mxu0  ;;  %824 = vpow2.f32 %v293_v19 }
 0x10d   : > { %v547_v17 = vsel %vm252_vm0, %v944_v16, -inf }
 0x10f   : > { %v370_v25 = vld [vmem:[#allocation2] sm:$0xff] }
 0x112   : > { %v948_v20 = vpop.eup %824 }
 0x132   : > { %548 = vmax.xlane.f32.xlu0 %v547_v17 }
 0x146   : > { %314 = vperm.xlu0 %813, %v948_v20  }
 0x14e   : > { %819 = vset.pattern.permute.xlu0 %v874_v39 }
 0x17a   : > { %v298_v22 = vpop.permute.xlu0 %297 }
 0x17b   : > { %v300_v23 = vsub.f32 %v284_v7, %v298_v22  ;;  %v303_v7 = vld [vmem:[#allocation3] sm:$0xff] }
 0x17c   : > { %v373_v24 = vpop.xlane.xlu1 %372  ;;  %v304_v8 = vmul.f32 %v948_v20, %v303_v7 }
 0x17d   : > { %v374_v26 = vmax.f32 %v370_v25, %v373_v24  ;;  %v301_v27 = vmul.f32 1.442695, %v300_v23 }
 0x17f   : > { %427 = vst.msk [vmem:[#allocation2] sm:$0xff] %vm392_vm3, %v374_v26  ;;  %826 = vpow2.f32 %v301_v27  ;;  %v375_v53 = vsub.f32 %v370_v25, %v374_v26 }
 0x181   : > { %v376_v54 = vmul.f32 1.442695, %v375_v53 }
 0x185   : > { %v827_v28 = vpop.eup %826 }
 0x186   : > { %765 = vmatmul.msk.f32.vlgmr.msra.gmra.mxu1 %vm252_vm0, %v827_v28  ;;  %v458_v41 = vld [vmem:[#allocation2] sm:$0xff]  ;;  %v305_v52 = vsel %vm252_vm0, %v827_v28, 0.0 }
 0x18e   : > { %770 = vmatmul.msk.f32.vlgmr.msrb.gmra.mxu1 %vm252_vm0, %v431_v3 }
 0x1a5   : > { %v549_v30 = vpop.xlane.xlu0 %548 }
 0x1b8   : > { %v315_v32 = vpop.permute.xlu0 %314 }
 0x1b9   : > { %v317_v33 = vmul.f32 %v315_v32, %v311_v31 }
 0x203   : > { %v338_v34 = vpop.f32.mrf.mxu1 }
 0x204   : > { %v341_v35 = vadd.f32 %v338_v34, %v317_v33  ;;  %v571_v33 = vld [vmem:[#allocation4 + $0x18] sm:$0xff] }
 0x206   : > { %342 = vst.msk [vmem:[#allocation4] sm:$0xff] %vm252_vm0, %v341_v35 }
 0x20b   : > { %v455_v36 = vpop.f32.mrf.mxu1 }
 0x20c   : > { %v459_v37 = vsel %vm252_vm0, %v455_v36, -inf }
 0x20d   : > { %460 = vmax.xlane.f32.xlu2 %v459_v37 }
 0x225   : > { %380 = vperm.xlu2 %814, %v374_v26   ;;  %v483_v26 = vld [vmem:[#allocation4 + $0x10] sm:$0xff] }
 0x22d   : > { %816 = vset.pattern.permute.xlu2 %v874_v39 }
 0x280   : > { %v461_v40 = vpop.xlane.xlu2 %460 }
 0x281   : > { %v462_v42 = vmax.f32 %v458_v41, %v461_v40 }
 0x283   : > { %v463_v43 = vsub.f32 %v458_v41, %v462_v42  ;;  %519 = vst.msk [vmem:[#allocation2] sm:$0xff] %vm480_vm4, %v462_v42  ;;  %468 = vperm.xlu1 %815, %v462_v42  }
 0x285   : > { %v464_v2 = vmul.f32 1.442695, %v463_v43 }
 0x288   : > { %v381_v44 = vpop.permute.xlu2 %380 }
 0x289   : > { %v383_v45 = vsub.f32 %v367_v14, %v381_v44 }
 0x28a   : > { %v546_v46 = vld [vmem:[#allocation2] sm:$0xff] }
 0x28b   : > { %v384_v47 = vmul.f32 1.442695, %v383_v45  ;;  %491 = vrot.lane.b32.xlu1 %v258_v21, %s866_s23  ;;  %v550_v48 = vmax.f32 %v546_v46, %v549_v30 }
 0x28c   : > { %817 = vset.pattern.permute.xlu1 %v872_v29 }
 0x28d   : > { %828 = vpow2.f32 %v384_v47  ;;  %556 = vperm.xlu2 %816, %v550_v48   ;;  %v551_v49 = vsub.f32 %v546_v46, %v550_v48  ;;  %603 = vst.msk [vmem:[#allocation2] sm:$0xff] %vm568_vm5, %v550_v48 }
 0x28e   : > { %830 = vpow2.f32 %v376_v54 }
 0x28f   : > { %v552_v5 = vmul.f32 1.442695, %v551_v49 }
 0x293   : > { %v829_v50 = vpop.eup %828 }
 0x294   : > { %768 = vmatmul.msk.f32.vlgmr.msra.gmra.mxu3 %vm252_vm0, %v829_v50  ;;  %v388_v51 = vsel %vm252_vm0, %v829_v50, 0.0  ;;  %v831_v55 = vpop.eup %830 }
 0x295   : > { %818 = vset.pattern.permute.xlu2 %v873_v38 }
 0x2b5   : > { %389 = vadd.xlane.f32.xlu1 %v388_v51 }
 0x2b6   : > { %306 = vadd.xlane.f32.xlu2 %v305_v52 }
 0x2ce   : > { %398 = vperm.xlu1 %817, %v831_v55  }
 0x2d6   : > { %820 = vset.pattern.permute.xlu1 %v870_v9 }
 0x2e7   : > { %v557_v56 = vpop.permute.xlu2 %556 }
 0x2e8   : > { %v559_v57 = vsub.f32 %v944_v16, %v557_v56 }
 0x2ea   : > { %v560_v58 = vmul.f32 1.442695, %v559_v57 }
 0x2ec   : > { %832 = vpow2.f32 %v560_v58 }
 0x2f2   : > { %v833_v59 = vpop.eup %832 }
 0x2f3   : > { %v564_v60 = vsel %vm252_vm0, %v833_v59, 0.0 }
 0x2f4   : > { %565 = vadd.xlane.f32.xlu2 %v564_v60 }
 0x2f5   : > { %v469_v61 = vpop.permute.xlu1 %468 }
 0x2f6   : > { %v471_v62 = vsub.f32 %v455_v36, %v469_v61 }
 0x2f8   : > { %v472_v63 = vmul.f32 1.442695, %v471_v62 }
 0x2fa   : > { %834 = vpow2.f32 %v472_v63 }
 0x2fb   : > { %836 = vpow2.f32 %v464_v2 }
 0x2fc   : > { %838 = vpow2.f32 %v552_v5 }
 0x2fd   : > { %v492_v0 = vpop.permute.xlu1 %491 }
 0x2fe   : > { %596 = vmatpush.msrb.mxu2 %v492_v0  ;;  %512 = vmatpush.msrb.mxu3 %v492_v0 }
 0x2ff   : > { %774 = vmatmul.msk.f32.vlgmr.msrb.gmra.mxu2 %vm252_vm0, %v833_v59 }
 0x300   : > { %v835_v1 = vpop.eup %834 }
 0x301   : > { %771 = vmatmul.msk.f32.vlgmr.msrb.gmra.mxu3 %vm252_vm0, %v835_v1  ;;  %v476_v3 = vsel %vm252_vm0, %v835_v1, 0.0  ;;  %v837_v4 = vpop.eup %836 }
 0x302   : > { %477 = vadd.xlane.f32.xlu0 %v476_v3  ;;  %v839_v6 = vpop.eup %838 }
 0x30c   : > { %486 = vperm.xlu2 %818, %v837_v4  }
 0x314   : > { %821 = vset.pattern.permute.xlu2 %v872_v29 }
 0x316   : > { %574 = vperm.xlu0 %819, %v839_v6  }
 0x317   : > { %v422_v18 = vpop.f32.mrf.mxu3 }
 0x328   : > { %v390_v13 = vpop.xlane.xlu1 %389 }
 0x329   : > { %v307_v9 = vpop.xlane.xlu2 %306 }
 0x32a   : > { %v308_v10 = vadd.f32 %v307_v9, %v304_v8 }
 0x32c   : > { %310 = vst.msk [vmem:[#allocation3] sm:$0xff] %vm309_vm2, %v308_v10 }
 0x333   : > { %v386_v11 = vld [vmem:[#allocation3] sm:$0xff] }
 0x334   : > { %v387_v12 = vmul.f32 %v831_v55, %v386_v11 }
 0x336   : > { %v391_v14 = vadd.f32 %v390_v13, %v387_v12 }
 0x338   : > { %393 = vst.msk [vmem:[#allocation3] sm:$0xff] %vm392_vm3, %v391_v14 }
 0x33f   : > { %v474_v21 = vld [vmem:[#allocation3] sm:$0xff] }
 0x340   : > { %v399_v16 = vpop.permute.xlu1 %398  ;;  %v475_v22 = vmul.f32 %v837_v4, %v474_v21 }
 0x341   : > { %v401_v17 = vmul.f32 %v399_v16, %v395_v15 }
 0x343   : > { %v425_v19 = vadd.f32 %v422_v18, %v401_v17 }
 0x345   : > { %426 = vst.msk [vmem:[#allocation4 + $0x8] sm:$0xff] %vm252_vm0, %v425_v19 }
 0x34c   : > { %v619_v42 = vld [vmem:[#allocation4 + $0x8] sm:$0xff] }
 0x367   : > { %v566_v23 = vpop.xlane.xlu2 %565 }
 0x36f   : > { %v487_v27 = vpop.permute.xlu2 %486 }
 0x370   : > { %v489_v30 = vmul.f32 %v487_v27, %v483_v26 }
 0x375   : > { %v478_v20 = vpop.xlane.xlu0 %477 }
 0x376   : > { %v479_v24 = vadd.f32 %v478_v20, %v475_v22 }
 0x378   : > { %481 = vst.msk [vmem:[#allocation3] sm:$0xff] %vm480_vm4, %v479_v24 }
 0x37f   : > { %v562_v25 = vld [vmem:[#allocation3] sm:$0xff] }
 0x380   : > { %v563_v28 = vmul.f32 %v839_v6, %v562_v25 }
 0x382   : > { %v567_v29 = vadd.f32 %v566_v23, %v563_v28  ;;  %v598_v36 = vpop.f32.mrf.mxu2 }
 0x384   : > { %569 = vst.msk [vmem:[#allocation3] sm:$0xff] %vm568_vm5, %v567_v29  ;;  %v514_v31 = vpop.f32.mrf.mxu3 }
 0x385   : > { %v517_v32 = vadd.f32 %v514_v31, %v489_v30 }
 0x387   : > { %518 = vst.msk [vmem:[#allocation4 + $0x10] sm:$0xff] %vm252_vm0, %v517_v32 }
 0x388   : > { %v575_v34 = vpop.permute.xlu0 %574 }
 0x389   : > { %v577_v35 = vmul.f32 %v575_v34, %v571_v33 }
 0x38b   : > { %v601_v37 = vadd.f32 %v598_v36, %v577_v35  ;;  %v617_v40 = vld [vmem:[#allocation3] sm:$0xff] }
 0x38c   : > { %840 = vrcp.f32 %v617_v40 }
 0x38d   : > { %602 = vst.msk [vmem:[#allocation4 + $0x18] sm:$0xff] %vm252_vm0, %v601_v37 }
 0x38e   : > { %v634_v45 = vld [vmem:[#allocation4 + $0x10] sm:$0xff] }
 0x392   : > { %v841_v41 = vpop.eup %840 }
 0x393   : > { %622 = vperm.xlu2 %821, %v841_v41   ;;  %612 = vperm.xlu1 %820, %v841_v41  }
 0x394   : > { %v649_v48 = vld [vmem:[#allocation4 + $0x18] sm:$0xff] }
 0x39b   : > { %822 = vset.pattern.permute.xlu2 %v873_v38  ;;  %v609_v38 = vld [vmem:[#allocation4] sm:$0xff] }
 0x39c   : > { %637 = vperm.xlu2 %822, %v841_v41  }
 0x3a4   : > { %823 = vset.pattern.permute.xlu2 %v874_v39 }
 0x3a5   : > { %652 = vperm.xlu2 %823, %v841_v41  }
 0x3ed   : > { %v623_v43 = vpop.permute.xlu2 %622 }
 0x3ee   : > { %v625_v44 = vmul.f32 %v623_v43, %v619_v42 }
 0x3f0   : > { %627 = vrot.lane.b32.xlu1 %v625_v44, %s875_s29 }
 0x3f6   : > { %v638_v46 = vpop.permute.xlu2 %637 }
 0x3f7   : > { %v640_v47 = vmul.f32 %v638_v46, %v634_v45 }
 0x3f9   : > { %642 = vrot.lane.b32.xlu1 %v640_v47, %s876_s30 }
 0x3ff   : > { %v653_v49 = vpop.permute.xlu2 %652 }
 0x400   : > { %v655_v50 = vmul.f32 %v653_v49, %v649_v48 }
 0x402   : > { %657 = vrot.lane.b32.xlu1 %v655_v50, %s877_s4 }
 0x405   : > { %v613_v39 = vpop.permute.xlu1 %612 }
 0x406   : > { %v615_v51 = vmul.f32 %v613_v39, %v609_v38 }
 0x408   : > { %616 = vst.msk [vmem:[%s243_s7] sm:$0xff] %vm252_vm0, %v615_v51 }
 0x462   : > { %v628_v52 = vpop.permute.xlu1 %627 }
 0x463   : > { %631 = vst.msk [vmem:[%s243_s7] sm:$0xff] %vm630_vm6, %v628_v52 }
 0x46b   : > { %v643_v53 = vpop.permute.xlu1 %642 }
 0x46c   : > { %646 = vst.msk [vmem:[%s243_s7] sm:$0xff] %vm645_vm7, %v643_v53 }
 0x474   : > { %v658_v54 = vpop.permute.xlu1 %657 }
 0x475   : > { %661 = vst.msk [vmem:[%s243_s7] sm:$0xff] %vm660_vm8, %v658_v54 }
 0x476 PF: > { %s13_s14 = sadd.s32 1, %s864_s14   ;;  %s1008_s12 = smov %s860_s13 }
 0x477   : > { %p10_p5 = scmp.ge.s32.totalorder %s13_s14, 4   ;;  %s1009_s13 = smov %s1011_s15 }
 0x479   :  { %12 = sbr.rel (!%p10_p5) target bundleno = 2 (0x2), region = 79 }

</bundles_post_ra>
